<compile_context>
chip_gen: v7x
topology: tpu7x:2x2x1
jax: 0.10.0
libtpu: 0.0.40
codegen_flags: <defaults>
</compile_context>

<pallas_src>
import functools

import jax
import jax.numpy as jnp
from jax.experimental import pallas as pl
from jax.experimental.pallas import tpu as pltpu


# ---------------------------------------------------------------- helpers ---
def _round_up(x, m):
    return ((x + m - 1) // m) * m


def _divisor_tiles(padded, max_tile):
    """Multiples of 128 that divide `padded`, descending, capped at max_tile.
    `padded` must be a multiple of 128, so the result always contains 128."""
    t = (min(max_tile, padded) // 128) * 128
    tiles = []
    while t >= 128:
        if padded % t == 0:
            tiles.append(t)
        t -= 128
    return tiles


# ----------------------------------------------------- projection kernels ---
def _proj_resident_kernel(x_ref, w_ref, o_ref, *, cd):
    # x_ref: (tile_m, k_pad)   w_ref: (k_pad, f_pad) resident
    # o_ref: (tile_m, f_pad)
    o_ref[...] = jnp.dot(x_ref[...].astype(cd), w_ref[...],
                         preferred_element_type=jnp.float32).astype(o_ref.dtype)


def _proj_stream_kernel(x_ref, w_ref, o_ref, acc_ref, *, cd):
    # Fallback when W is too large to hold resident: stream over K.
    @pl.when(pl.program_id(1) == 0)
    def _():
        acc_ref[...] = jnp.zeros_like(acc_ref)

    acc_ref[...] += jnp.dot(x_ref[...].astype(cd), w_ref[...],
                            preferred_element_type=jnp.float32)

    @pl.when(pl.program_id(1) == pl.num_programs(1) - 1)
    def _():
        o_ref[...] = acc_ref[...].astype(o_ref.dtype)


def _projection(x2, w2, cd, *, vmem_budget, max_m_tile, max_k_tile):
    """x2: (m, k_pad) f32 or cd; w2: (k_pad, f_pad) cd.  Returns (m, f_pad) cd."""
    m, k_pad = x2.shape
    f_pad = w2.shape[1]
    x_isz = x2.dtype.itemsize
    cd_isz = jnp.dtype(cd).itemsize

    flops = 2 * m * k_pad * f_pad
    bytes_accessed = (m * k_pad * x_isz + k_pad * f_pad * cd_isz
                      + m * f_pad * cd_isz)

    # -------- resident-W path: whole weight in VMEM, one dot per row tile ---
    w_bytes = k_pad * f_pad * cd_isz
    if w_bytes <= 4 * 1024 * 1024:
        for tm in _divisor_tiles(m, max_m_tile):
            need = (tm * k_pad * x_isz * 2        # x double buffer
                    + w_bytes * 2                 # resident W (+spare buffer)
                    + tm * f_pad * cd_isz * 2)    # out double buffer
            if need <= vmem_budget:
                return pl.pallas_call(
                    functools.partial(_proj_resident_kernel, cd=cd),
                    out_shape=jax.ShapeDtypeStruct((m, f_pad), cd),
                    grid=(m // tm,),
                    in_specs=[
                        pl.BlockSpec((tm, k_pad), lambda i: (i, 0)),
                        pl.BlockSpec((k_pad, f_pad), lambda i: (0, 0)),
                    ],
                    out_specs=pl.BlockSpec((tm, f_pad), lambda i: (i, 0)),
                    compiler_params=pltpu.CompilerParams(
                        dimension_semantics=("parallel",),
                        vmem_limit_bytes=vmem_budget,
                    ),
                    cost_estimate=pl.CostEstimate(
                        flops=flops, transcendentals=0,
                        bytes_accessed=bytes_accessed),
                )(x2, w2)

    # -------- streaming-K fallback for very large weights --------------------
    tile_m, tile_k = 128, 128
    done = False
    for tm in _divisor_tiles(m, max_m_tile):
        for tk in _divisor_tiles(k_pad, max_k_tile):
            need = (tm * tk * x_isz * 2 + tk * f_pad * cd_isz * 2
                    + tm * f_pad * cd_isz * 2 + tm * f_pad * 4)
            if need <= vmem_budget:
                tile_m, tile_k, done = tm, tk, True
                break
        if done:
            break
    bytes_accessed = (m * k_pad * x_isz
                      + (m // tile_m) * k_pad * f_pad * cd_isz
                      + m * f_pad * cd_isz)
    return pl.pallas_call(
        functools.partial(_proj_stream_kernel, cd=cd),
        out_shape=jax.ShapeDtypeStruct((m, f_pad), cd),
        grid=(m // tile_m, k_pad // tile_k),
        in_specs=[
            pl.BlockSpec((tile_m, tile_k), lambda i, k: (i, k)),
            pl.BlockSpec((tile_k, f_pad), lambda i, k: (k, 0)),
        ],
        out_specs=pl.BlockSpec((tile_m, f_pad), lambda i, k: (i, 0)),
        scratch_shapes=[pltpu.VMEM((tile_m, f_pad), jnp.float32)],
        compiler_params=pltpu.CompilerParams(
            dimension_semantics=("parallel", "arbitrary"),
            vmem_limit_bytes=vmem_budget,
        ),
        cost_estimate=pl.CostEstimate(
            flops=flops, transcendentals=0, bytes_accessed=bytes_accessed),
    )(x2, w2)


# ---------------------------------------------------- aggregation kernel ----
def _agg_kernel(alpha_ref, adj_ref, h_ref, bias_ref, o_ref, acc_ref, *,
                tile_n, h_resident, cd):
    # alpha_ref: SMEM (1,1) f32
    # adj_ref  : (1, tile_n, tile_n)  f32 or cd
    # h_ref    : (1, n_pad, f_pad) if h_resident else (1, tile_n, f_pad)  cd
    # bias_ref : (1, f_pad) f32
    # o_ref    : (1, tile_n, f_pad)
    # acc_ref  : (tile_n, f_pad) f32 scratch
    k = pl.program_id(2)

    @pl.when(k == 0)
    def _():
        acc_ref[...] = jnp.zeros_like(acc_ref)

    a_tile = adj_ref[0].astype(cd)          # in-kernel VPU cast (no-op if cd)
    if h_resident:
        start = pl.multiple_of(k * tile_n, 128)
        h_k = h_ref[0, pl.ds(start, tile_n), :]
    else:
        h_k = h_ref[0]
    acc_ref[...] += jnp.dot(a_tile, h_k, preferred_element_type=jnp.float32)

    @pl.when(k == pl.num_programs(2) - 1)
    def _():
        out = acc_ref[...] + bias_ref[...]          # (tile_n,f) + (1,f)
        alpha = alpha_ref[0, 0]
        o_ref[0] = jnp.where(out > 0, out, alpha * out).astype(o_ref.dtype)


def _aggregate(alpha2, adj_p, h3, bias2, cd, out_dtype, *,
               vmem_budget, max_node_tile):
    B, n_pad, _ = adj_p.shape
    f_pad = h3.shape[-1]
    adj_isz = adj_p.dtype.itemsize
    h_isz = h3.dtype.itemsize
    out_isz = jnp.dtype(out_dtype).itemsize

    def vmem_need(tn, resident):
        h_rows = n_pad if resident else tn
        return (h_rows * f_pad * h_isz * 2        # h (double buffered over b)
                + tn * tn * adj_isz * 2           # adj tile
                + tn * f_pad * out_isz * 2        # out tile
                + tn * f_pad * 4                  # f32 accumulator scratch
                + f_pad * 4 * 2)                  # bias

    tiles = _divisor_tiles(n_pad, max_node_tile)
    h_resident, tile_n = True, None
    for t in tiles:
        if vmem_need(t, True) <= vmem_budget:
            tile_n = t
            break
    if tile_n is None:
        h_resident = False
        tile_n = next((t for t in tiles if vmem_need(t, False) <= vmem_budget),
                      128)

    n_k = n_pad // tile_n
    flops = 2 * B * n_pad * n_pad * f_pad
    h_reads = 1 if h_resident else n_k
    bytes_accessed = (B * n_pad * n_pad * adj_isz
                      + B * n_pad * f_pad * h_isz * h_reads
                      + f_pad * 4
                      + B * n_pad * f_pad * out_isz)

    if h_resident:
        h_spec = pl.BlockSpec((1, n_pad, f_pad), lambda b, i, k: (b, 0, 0))
    else:
        h_spec = pl.BlockSpec((1, tile_n, f_pad), lambda b, i, k: (b, k, 0))

    return pl.pallas_call(
        functools.partial(_agg_kernel, tile_n=tile_n, h_resident=h_resident,
                          cd=cd),
        out_shape=jax.ShapeDtypeStruct((B, n_pad, f_pad), out_dtype),
        grid=(B, n_pad // tile_n, n_k),
        in_specs=[
            pl.BlockSpec(memory_space=pltpu.SMEM),                         # alpha
            pl.BlockSpec((1, tile_n, tile_n), lambda b, i, k: (b, i, k)),  # adj
            h_spec,                                                        # h
            pl.BlockSpec((1, f_pad), lambda b, i, k: (0, 0)),              # bias
        ],
        out_specs=pl.BlockSpec((1, tile_n, f_pad), lambda b, i, k: (b, i, 0)),
        scratch_shapes=[pltpu.VMEM((tile_n, f_pad), jnp.float32)],
        compiler_params=pltpu.CompilerParams(
            dimension_semantics=("parallel", "parallel", "arbitrary"),
            vmem_limit_bytes=vmem_budget,
        ),
        cost_estimate=pl.CostEstimate(
            flops=flops, transcendentals=0, bytes_accessed=bytes_accessed),
    )(alpha2, adj_p, h3, bias2)


# ------------------------------------------------------------- wrapper ------
def gcn_forward(seq, adj, weight, bias, alpha, *,
                compute_dtype=jnp.bfloat16,
                out_dtype=jnp.float32,
                max_node_tile=512, max_k_tile=512, max_m_tile=512,
                vmem_budget_bytes=48 * 1024 * 1024):
    """seq: (B, N, in_ft), adj: (B, N, N), weight: (out_ft, in_ft),
    bias: (out_ft,), alpha: scalar.  Returns (B, N, out_ft) out_dtype."""
    B, N, in_ft = seq.shape
    out_ft = weight.shape[0]
    cd = compute_dtype

    n_pad = _round_up(N, 128)
    k_pad = _round_up(in_ft, 128)
    f_pad = _round_up(out_ft, 128)                      # lane-dense output

    # ---- projection: flatten (B, N, in_ft) -> one big matmul ---------------
    if n_pad == N and k_pad == in_ft:
        # No padding needed: feed f32 directly and cast in-kernel (avoids an
        # extra HBM pass over seq).
        x2 = seq.reshape(B * n_pad, k_pad)
    else:
        # Fused pad + cast, single pass.
        x2 = jnp.pad(seq, ((0, 0), (0, n_pad - N),
                           (0, k_pad - in_ft))).astype(cd)
        x2 = x2.reshape(B * n_pad, k_pad)
    w2 = jnp.pad(weight.T,
                 ((0, k_pad - in_ft), (0, f_pad - out_ft))).astype(cd)

    h_flat = _projection(x2, w2, cd, vmem_budget=vmem_budget_bytes,
                         max_m_tile=max_m_tile, max_k_tile=max_k_tile)
    h3 = h_flat.reshape(B, n_pad, f_pad)                # view, no copy

    # ---- aggregation: adj @ h + bias, then PReLU ----------------------------
    if n_pad == N:
        adj_p = adj                                     # f32, cast in-kernel
    else:
        adj_p = jnp.pad(adj, ((0, 0), (0, n_pad - N),
                              (0, n_pad - N))).astype(cd)
    bias2 = jnp.pad(bias.astype(jnp.float32),
                    (0, f_pad - out_ft)).reshape(1, f_pad)
    alpha2 = jnp.asarray(alpha, jnp.float32).reshape(1, 1)

    out_p = _aggregate(alpha2, adj_p, h3, bias2, cd, out_dtype,
                       vmem_budget=vmem_budget_bytes,
                       max_node_tile=max_node_tile)

    return out_p[:, :N, :out_ft]


# --------------------------------------------------------------- test -------
def xavier_uniform(key, out_ft, in_ft):
    # torch.nn.init.xavier_uniform_ on an (out_ft, in_ft) Linear weight
    limit = (6.0 / (in_ft + out_ft)) ** 0.5
    return jax.random.uniform(key, (out_ft, in_ft), jnp.float32, -limit, limit)


def _reference(seq, adj, weight, bias, alpha, cd=jnp.bfloat16):
    # Plain-JAX reference applying the same bf16 rounding the kernels use.
    seq_c = seq.astype(cd).astype(jnp.float32)
    adj_c = adj.astype(cd).astype(jnp.float32)
    w_c = weight.astype(cd).astype(jnp.float32)
    seq_fts = jnp.einsum("bnk,ok->bno", seq_c, w_c)
    seq_fts = seq_fts.astype(cd).astype(jnp.float32)    # intermediate is bf16
    out = jnp.einsum("bnm,bmo->bno", adj_c, seq_fts) + bias
    return jnp.where(out > 0, out, alpha * out)


if __name__ == "__main__":
    key = jax.random.PRNGKey(0)
    k_seq, k_adj, k_w, k_seq2, k_adj2, k_w2 = jax.random.split(key, 6)

    alpha = jnp.float32(0.25)                           # PReLU default init

    # Case 1: small shapes that need padding (fused pad+cast path).
    B, N, in_ft, out_ft = 2, 16, 32, 32
    seq = jax.random.normal(k_seq, (B, N, in_ft), jnp.float32)
    adj = jax.random.uniform(k_adj, (B, N, N), jnp.float32)
    weight = xavier_uniform(k_w, out_ft, in_ft)
    bias = jnp.zeros((out_ft,), jnp.float32)            # PyTorch fills with 0

    out = jax.block_until_ready(gcn_forward(seq, adj, weight, bias, alpha))
    assert out.shape == (B, N, out_ft)
    ref = _reference(seq, adj, weight, bias, alpha)
    err1 = float(jnp.max(jnp.abs(out - ref)))
    assert jnp.allclose(out, ref, atol=2e-2, rtol=2e-2), err1

    # Case 2: 128-aligned shapes (no-pad f32 inputs, in-kernel cast) with a
    # forced small node tile so resident-h runs multiple K steps per row tile.
    B2, N2, in2, out2 = 2, 256, 128, 64
    seq2 = jax.random.normal(k_seq2, (B2, N2, in2), jnp.float32)
    adj2 = jax.random.uniform(k_adj2, (B2, N2, N2), jnp.float32)
    weight2 = xavier_uniform(k_w2, out2, in2)
    bias_2 = jnp.zeros((out2,), jnp.float32)

    out2_arr = jax.block_until_ready(
        gcn_forward(seq2, adj2, weight2, bias_2, alpha, max_node_tile=128))
    assert out2_arr.shape == (B2, N2, out2)
    ref2 = _reference(seq2, adj2, weight2, bias_2, alpha)
    err2 = float(jnp.max(jnp.abs(out2_arr - ref2)))
    assert jnp.allclose(out2_arr, ref2, atol=2e-2, rtol=2e-2), err2

    print("KERNEL_OK")
</pallas_src>

<mosaic_0001>
module attributes {stable_mosaic.version = 11 : i64} {
  func.func @_proj_resident_kernel(%arg0: i32, %arg1: memref<256x128xbf16, #tpu.memory_space<vmem>>, %arg2: memref<128x128xbf16, #tpu.memory_space<vmem>>, %arg3: memref<256x128xbf16, #tpu.memory_space<vmem>>) attributes {dimension_semantics = [#tpu.dimension_semantics<parallel>], iteration_bounds = array<i64: 1>, scalar_prefetch = 0 : i64, scratch_operands = 0 : i64, tpu.core_type = #tpu.core_type<tc>, window_params = [{transform_indices = @transform_0, window_bounds = array<i64: 256, 128>}, {pipeline_mode = #tpu.pipeline_mode<synchronous>, transform_indices = @transform_1, window_bounds = array<i64: 128, 128>}, {transform_indices = @transform_2, window_bounds = array<i64: 256, 128>}]} {
    %c0 = arith.constant 0 : index
    %c0_0 = arith.constant 0 : index
    %0 = vector.load %arg1[%c0, %c0_0] : memref<256x128xbf16, #tpu.memory_space<vmem>>, vector<256x128xbf16>
    %c0_1 = arith.constant 0 : index
    %c0_2 = arith.constant 0 : index
    %1 = vector.load %arg2[%c0_1, %c0_2] : memref<128x128xbf16, #tpu.memory_space<vmem>>, vector<128x128xbf16>
    %cst = arith.constant dense<0.000000e+00> : vector<256x128xf32>
    %2 = tpu.matmul %0, %1, %cst {dimension_numbers = #tpu.dot_dimension_numbers<[1], [0], [0], [1], [0, 0, 1, 1], [], []>} : vector<256x128xbf16>, vector<128x128xbf16>, vector<256x128xf32> -> vector<256x128xf32>
    %3 = arith.truncf %2 : vector<256x128xf32> to vector<256x128xbf16>
    %c0_3 = arith.constant 0 : index
    %c0_4 = arith.constant 0 : index
    %4 = vector.load %arg3[%c0_3, %c0_4] : memref<256x128xbf16, #tpu.memory_space<vmem>>, vector<256x128xbf16>
    tpu.vector_store %arg3[%c0_3, %c0_4], %3 {strides = array<i32>} : memref<256x128xbf16, #tpu.memory_space<vmem>>, vector<256x128xbf16>,
    return
  }
  func.func @transform_0(%arg0: i32) -> (i32, i32) {
    %c0_i32 = arith.constant 0 : i32
    %c0_i32_0 = arith.constant 0 : i32
    return %arg0, %c0_i32 : i32, i32
  }
  func.func @transform_1(%arg0: i32) -> (i32, i32) {
    %c0_i32 = arith.constant 0 : i32
    %c0_i32_0 = arith.constant 0 : i32
    %c0_i32_1 = arith.constant 0 : i32
    return %c0_i32, %c0_i32_0 : i32, i32
  }
  func.func @transform_2(%arg0: i32) -> (i32, i32) {
    %c0_i32 = arith.constant 0 : i32
    %c0_i32_0 = arith.constant 0 : i32
    return %arg0, %c0_i32 : i32, i32
  }
}

</mosaic_0001>

<bundles_post_ra>
// kernel: tpu_custom_call.1
= control target key start
LH: loop header
LB: loop body
LE: loop exit
PB: predicated region body
PF: predicated region fallthrough
CT: control target
= control target key end

     0   :  { %7 = vsyncpa [#allocation3], 0  ;;  %s1009_s0 = inlined_call_operand.hbm [shape: bf16[256,128], index: 0, kind: input, shape index: {}]   ;;  %s1010_s1 = inlined_call_operand.hbm [shape: bf16[128,128], index: 1, kind: input, shape index: {}]   ;;  %s1011_s2 = inlined_call_operand.hbm [shape: bf16[256,128], index: 2, kind: output, shape index: {}]  }
   0x1   :  { %8 = vsyncpa [#allocation6], 0 }
   0x2   :  { %9 = vsyncpa [#allocation4], 0  ;;  %s944_s9 = smov [#allocation2]   ;;  %s872_s13 = scalar_lea.hbm %s1009_s0, 2048 }
   0x3   :  { %s15_s10 = sshll.u32 %s944_s9, 4  ;;  %p873_p0 = scmp.ne.s32.totalorder %s1009_s0, %s872_s13  ;;  %s16_s10 = int_to_ptr.vmem [resolvable:$true] %s15_s10 }
   0x4   :  { %p876_p1 = scmp.lt.u32.totalorder %s872_s13, %s1009_s0 }
   0x6   :  { %p878_p2 = pnand %p876_p1, %p873_p0 }
   0x8   :  { %881 = shalt.err (!%p878_p2)
}
   0x9   :  { %s882_s18 = scalar_lea.vmem %s16_s10, 2048  ;;  %p887_p4 = scmp.lt.s32.totalorder %s16_s10, %s16_s10 }
   0xa   :  { %p883_p3 = scmp.ne.s32.totalorder %s16_s10, %s882_s18  ;;  %p888_p5 = scmp.lt.s32.totalorder %s882_s18, %s882_s18 }
   0xc   :  { %p889_p6 = por %p888_p5, %p887_p4 }
   0xe   :  { %p890_p7 = pnand %p889_p6, %p883_p3 }
  0x10   :  { %893 = shalt.err (!%p890_p7)
}
  0x11   :  { %s945_s19 = smov 64   ;;  %s946_s20 = smov 4  }
  0x12   :  { %21 = dma.hbm_to_vmem [thread:$0]  %s1009_s0, 2048, %s16_s10, [#allocation3], %s945_s19, %s945_s19, %s946_s20  }
  0x13   :  { %s947_s23 = smov [#allocation5]   ;;  %s894_s27 = scalar_lea.hbm %s1010_s1, 1024 }
  0x14   :  { %s27_s24 = sshll.u32 %s947_s23, 4  ;;  %p895_p8 = scmp.ne.s32.totalorder %s1010_s1, %s894_s27  ;;  %s28_s24 = int_to_ptr.vmem [resolvable:$true] %s27_s24 }
  0x15   :  { %p898_p9 = scmp.lt.u32.totalorder %s894_s27, %s1010_s1 }
  0x17   :  { %p900_p10 = pnand %p898_p9, %p895_p8 }
  0x19   :  { %903 = shalt.err (!%p900_p10)
}
  0x1a   :  { %s904_s4 = scalar_lea.vmem %s28_s24, 1024  ;;  %p909_p12 = scmp.lt.s32.totalorder %s28_s24, %s28_s24 }
  0x1b   :  { %p905_p11 = scmp.ne.s32.totalorder %s28_s24, %s904_s4  ;;  %p910_p13 = scmp.lt.s32.totalorder %s904_s4, %s904_s4 }
  0x1d   :  { %p911_p0 = por %p910_p13, %p909_p12 }
  0x1f   :  { %p912_p1 = pnand %p911_p0, %p905_p11 }
  0x21   :  { %915 = shalt.err (!%p912_p1)
}
  0x22   :  { %33 = dma.hbm_to_vmem [thread:$0]  %s1010_s1, 1024, %s28_s24, [#allocation6], %s945_s19, %s945_s19, %s946_s20  }
  0x23   :  { %938 = dma.done.wait [#allocation3], 2048  }
  0x24   :  { %939 = vsyncadd [#allocation3], 4294965248 }
  0x25   :  { %940 = dma.done.wait [#allocation6], 1024  }
  0x26   :  { %941 = vsyncadd [#allocation6], 4294966272  ;;  %v848_v0 = vld [vmem:[#allocation5] sm:$0xff]   ;;  %v849_v1 = vld [vmem:[#allocation5 + $0x8] sm:$0xff]   ;;  %s948_s1 = smov [#allocation7]  }
  0x27   :  { %779 = vmatprep.subr.bf16.mxu0 %v848_v0  ;;  %827 = vmatprep.subr.bf16.mxu1 %v848_v0  ;;  %v850_v2 = vld [vmem:[#allocation5 + $0x10] sm:$0xff]   ;;  %v851_v3 = vld [vmem:[#allocation5 + $0x18] sm:$0xff]   ;;  %v856_v4 = vld [vmem:[#allocation2] sm:$0xff]   ;;  %s559_s6 = sshll.u32 %s948_s1, 4  ;;  %s560_s6 = int_to_ptr.vmem [resolvable:$true] %s559_s6 }
  0x28   :  { %780 = vmatpush3.bf16.msra.mxu0 %v848_v0  ;;  %835 = vmatpush3.bf16.msra.mxu1 %v848_v0  ;;  %v857_v5 = vld [vmem:[#allocation2 + $0x40] sm:$0xff]   ;;  %v853_v7 = vld [vmem:[#allocation5 + $0x28] sm:$0xff]   ;;  %v854_v8 = vld [vmem:[#allocation5 + $0x30] sm:$0xff]   ;;  %s916_s7 = scalar_lea.vmem %s560_s6, 2048  ;;  %p921_p3 = scmp.lt.s32.totalorder %s560_s6, %s560_s6 }
  0x29   :  { %781 = vmatprep.subr.bf16.mxu0 %v849_v1  ;;  %828 = vmatprep.subr.bf16.mxu1 %v849_v1  ;;  %v852_v6 = vld [vmem:[#allocation5 + $0x20] sm:$0xff]   ;;  %v855_v9 = vld [vmem:[#allocation5 + $0x38] sm:$0xff]   ;;  %v858_v10 = vld [vmem:[#allocation2 + $0x8] sm:$0xff]   ;;  %p917_p2 = scmp.ne.s32.totalorder %s560_s6, %s916_s7  ;;  %p922_p4 = scmp.lt.s32.totalorder %s916_s7, %s916_s7 }
  0x2a   :  { %795 = vmatprep.mubr.bf16.mxu0 %v856_v4  ;;  %811 = vmatprep.mubr.bf16.mxu1 %v857_v5  ;;  %v859_v11 = vld [vmem:[#allocation2 + $0x48] sm:$0xff]   ;;  %v860_v12 = vld [vmem:[#allocation2 + $0x10] sm:$0xff]   ;;  %v862_v14 = vld [vmem:[#allocation2 + $0x18] sm:$0xff]  }
  0x2b   :  { %v861_v13 = vld [vmem:[#allocation2 + $0x50] sm:$0xff]   ;;  %v863_v15 = vld [vmem:[#allocation2 + $0x58] sm:$0xff]   ;;  %v864_v16 = vld [vmem:[#allocation2 + $0x20] sm:$0xff]   ;;  %p923_p5 = por %p922_p4, %p921_p3 }
  0x2c   :  { %782 = vmatpush3.bf16.msra.mxu0 %v849_v1  ;;  %836 = vmatpush3.bf16.msra.mxu1 %v849_v1  ;;  %v865_v17 = vld [vmem:[#allocation2 + $0x60] sm:$0xff]   ;;  %v866_v18 = vld [vmem:[#allocation2 + $0x28] sm:$0xff]   ;;  %v868_v20 = vld [vmem:[#allocation2 + $0x30] sm:$0xff]  }
  0x2d   :  { %783 = vmatprep.subr.bf16.mxu0 %v850_v2  ;;  %829 = vmatprep.subr.bf16.mxu1 %v850_v2  ;;  %v867_v19 = vld [vmem:[#allocation2 + $0x68] sm:$0xff]   ;;  %v869_v21 = vld [vmem:[#allocation2 + $0x70] sm:$0xff]   ;;  %v870_v22 = vld [vmem:[#allocation2 + $0x38] sm:$0xff]   ;;  %p924_p6 = pnand %p923_p5, %p917_p2 }
  0x2e   :  { %v871_v23 = vld [vmem:[#allocation2 + $0x78] sm:$0xff]  }
  0x30   :  { %784 = vmatpush3.bf16.msra.mxu0 %v850_v2  ;;  %837 = vmatpush3.bf16.msra.mxu1 %v850_v2 }
  0x31   :  { %785 = vmatprep.subr.bf16.mxu0 %v851_v3  ;;  %830 = vmatprep.subr.bf16.mxu1 %v851_v3 }
  0x34   :  { %786 = vmatpush3.bf16.msra.mxu0 %v851_v3  ;;  %838 = vmatpush3.bf16.msra.mxu1 %v851_v3 }
  0x35   :  { %787 = vmatprep.subr.bf16.mxu0 %v852_v6  ;;  %831 = vmatprep.subr.bf16.mxu1 %v852_v6 }
  0x38   :  { %788 = vmatpush3.bf16.msra.mxu0 %v852_v6  ;;  %839 = vmatpush3.bf16.msra.mxu1 %v852_v6 }
  0x39   :  { %789 = vmatprep.subr.bf16.mxu0 %v853_v7  ;;  %832 = vmatprep.subr.bf16.mxu1 %v853_v7 }
  0x3c   :  { %790 = vmatpush3.bf16.msra.mxu0 %v853_v7  ;;  %840 = vmatpush3.bf16.msra.mxu1 %v853_v7 }
  0x3d   :  { %791 = vmatprep.subr.bf16.mxu0 %v854_v8  ;;  %833 = vmatprep.subr.bf16.mxu1 %v854_v8 }
  0x40   :  { %792 = vmatpush3.bf16.msra.mxu0 %v854_v8  ;;  %841 = vmatpush3.bf16.msra.mxu1 %v854_v8 }
  0x41   :  { %793 = vmatprep.subr.bf16.mxu0 %v855_v9  ;;  %834 = vmatprep.subr.bf16.mxu1 %v855_v9 }
  0x44   :  { %794 = vmatpush3.bf16.msra.mxu0 %v855_v9  ;;  %842 = vmatpush3.bf16.msra.mxu1 %v855_v9 }
  0x47   :  { %796 = vmatmul.mubr.bf16.vlgmr.msra.gmra.mrb[0].mxu0 %v858_v10  ;;  %812 = vmatmul.mubr.bf16.vlgmr.msra.gmra.mrb[0].mxu1 %v859_v11 }
  0x48   :  { %799 = vmatprep.mubr.bf16.mxu0 %v860_v12  ;;  %815 = vmatprep.mubr.bf16.mxu1 %v861_v13 }
  0x4f   :  { %800 = vmatmul.mubr.bf16.gmra.mrb[4].mxu0 %v862_v14  ;;  %816 = vmatmul.mubr.bf16.gmra.mrb[4].mxu1 %v863_v15 }
  0x50   :  { %803 = vmatprep.mubr.bf16.mxu0 %v864_v16  ;;  %819 = vmatprep.mubr.bf16.mxu1 %v865_v17 }
  0x57   :  { %804 = vmatmul.mubr.bf16.gmra.mrb[8].mxu0 %v866_v18  ;;  %820 = vmatmul.mubr.bf16.gmra.mrb[8].mxu1 %v867_v19 }
  0x58   :  { %807 = vmatprep.mubr.bf16.mxu0 %v868_v20  ;;  %823 = vmatprep.mubr.bf16.mxu1 %v869_v21 }
  0x5f   :  { %808 = vmatmul.mubr.bf16.gmra.mrb[12].mxu0 %v870_v22  ;;  %824 = vmatmul.mubr.bf16.gmra.mrb[12].mxu1 %v871_v23 }
 0x11a   :  { %v797_v24 = vpop.f32.mrb[0].mxu0  ;;  %v813_v25 = vpop.f32.mrb[0].mxu1 }
 0x11b   :  { %v267_v26 = vpop.f32.mrb[1].mxu0  ;;  %v331_v27 = vpop.f32.mrb[1].mxu1 }
 0x11c   :  { %v798_v28 = vpop.f32.mrb[2].mxu0  ;;  %v814_v29 = vpop.f32.mrb[2].mxu1 }
 0x11d   :  { %v668_v30 = vpack.c.bf16 %v798_v28, %v797_v24  ;;  %v708_v31 = vpack.c.bf16 %v814_v29, %v813_v25  ;;  %v270_v32 = vpop.f32.mrb[3].mxu0  ;;  %v334_v33 = vpop.f32.mrb[3].mxu1 }
 0x11e   :  { %v663_v34 = vpack.c.bf16 %v270_v32, %v267_v26  ;;  %v703_v35 = vpack.c.bf16 %v334_v33, %v331_v27 }
 0x11f   :  { %740 = vst [vmem:[#allocation7 + $0x8] sm:$0xff] %v668_v30   ;;  %748 = vst [vmem:[#allocation7 + $0x48] sm:$0xff] %v708_v31  }
 0x120   :  { %664 = vst [vmem:[#allocation7] sm:$0xff] %v663_v34   ;;  %747 = vst [vmem:[#allocation7 + $0x40] sm:$0xff] %v703_v35  }
 0x122   :  { %v801_v36 = vpop.f32.mrb[4].mxu0  ;;  %v817_v37 = vpop.f32.mrb[4].mxu1 }
 0x123   :  { %v283_v38 = vpop.f32.mrb[5].mxu0  ;;  %v347_v39 = vpop.f32.mrb[5].mxu1 }
 0x124   :  { %v802_v40 = vpop.f32.mrb[6].mxu0  ;;  %v818_v41 = vpop.f32.mrb[6].mxu1 }
 0x125   :  { %v678_v42 = vpack.c.bf16 %v802_v40, %v801_v36  ;;  %v718_v43 = vpack.c.bf16 %v818_v41, %v817_v37  ;;  %v286_v44 = vpop.f32.mrb[7].mxu0  ;;  %v350_v45 = vpop.f32.mrb[7].mxu1 }
 0x126   :  { %v673_v46 = vpack.c.bf16 %v286_v44, %v283_v38  ;;  %v713_v47 = vpack.c.bf16 %v350_v45, %v347_v39 }
 0x127   :  { %742 = vst [vmem:[#allocation7 + $0x18] sm:$0xff] %v678_v42   ;;  %750 = vst [vmem:[#allocation7 + $0x58] sm:$0xff] %v718_v43  }
 0x128   :  { %741 = vst [vmem:[#allocation7 + $0x10] sm:$0xff] %v673_v46   ;;  %749 = vst [vmem:[#allocation7 + $0x50] sm:$0xff] %v713_v47  }
 0x12a   :  { %v805_v48 = vpop.f32.mrb[8].mxu0  ;;  %v821_v49 = vpop.f32.mrb[8].mxu1 }
 0x12b   :  { %v299_v50 = vpop.f32.mrb[9].mxu0  ;;  %v363_v51 = vpop.f32.mrb[9].mxu1 }
 0x12c   :  { %v806_v52 = vpop.f32.mrb[10].mxu0  ;;  %v822_v53 = vpop.f32.mrb[10].mxu1 }
 0x12d   :  { %v688_v54 = vpack.c.bf16 %v806_v52, %v805_v48  ;;  %v728_v55 = vpack.c.bf16 %v822_v53, %v821_v49  ;;  %v302_v56 = vpop.f32.mrb[11].mxu0  ;;  %v366_v57 = vpop.f32.mrb[11].mxu1 }
 0x12e   :  { %v683_v58 = vpack.c.bf16 %v302_v56, %v299_v50  ;;  %v723_v59 = vpack.c.bf16 %v366_v57, %v363_v51 }
 0x12f   :  { %744 = vst [vmem:[#allocation7 + $0x28] sm:$0xff] %v688_v54   ;;  %752 = vst [vmem:[#allocation7 + $0x68] sm:$0xff] %v728_v55  }
 0x130   :  { %743 = vst [vmem:[#allocation7 + $0x20] sm:$0xff] %v683_v58   ;;  %751 = vst [vmem:[#allocation7 + $0x60] sm:$0xff] %v723_v59  }
 0x132   :  { %v809_v60 = vpop.f32.mrb[12].mxu0  ;;  %v825_v61 = vpop.f32.mrb[12].mxu1 }
 0x133   :  { %v315_v62 = vpop.f32.mrb[13].mxu0  ;;  %v379_v63 = vpop.f32.mrb[13].mxu1 }
 0x134   :  { %v810_v0 = vpop.f32.mrb[14].mxu0  ;;  %v826_v1 = vpop.f32.mrb[14].mxu1 }
 0x135   :  { %v698_v2 = vpack.c.bf16 %v810_v0, %v809_v60  ;;  %v738_v3 = vpack.c.bf16 %v826_v1, %v825_v61  ;;  %v318_v4 = vpop.f32.mrb[15].mxu0  ;;  %v382_v5 = vpop.f32.mrb[15].mxu1 }
 0x136   :  { %v693_v6 = vpack.c.bf16 %v318_v4, %v315_v62  ;;  %v733_v7 = vpack.c.bf16 %v382_v5, %v379_v63 }
 0x137   :  { %746 = vst [vmem:[#allocation7 + $0x38] sm:$0xff] %v698_v2   ;;  %754 = vst [vmem:[#allocation7 + $0x78] sm:$0xff] %v738_v3  }
 0x138   :  { %745 = vst [vmem:[#allocation7 + $0x30] sm:$0xff] %v693_v6   ;;  %753 = vst [vmem:[#allocation7 + $0x70] sm:$0xff] %v733_v7  }
 0x139   :  { %927 = shalt.err (!%p924_p6)
}
 0x13a   :  { %s928_s10 = scalar_lea.hbm %s1011_s2, 2048 }
 0x13b   :  { %p929_p7 = scmp.ne.s32.totalorder %s1011_s2, %s928_s10  ;;  %p932_p8 = scmp.lt.u32.totalorder %s928_s10, %s1011_s2 }
 0x13d   :  { %p934_p9 = pnand %p932_p8, %p929_p7 }
 0x13f   :  { %937 = shalt.err (!%p934_p9)
}
 0x140   :  { %565 = dma.vmem_to_hbm [thread:$0]  %s560_s6, 2048, %s1011_s2, [#allocation4], %s945_s19, %s945_s19, %s946_s20  }
 0x141   :  { %942 = dma.done.wait [#allocation4], 2048  }
 0x142   :  { %943 = vsyncadd [#allocation4], 4294965248 }
 0x143   :  { %569 = vsyncpa [#allocation3], 1 }
 0x144   :  { %570 = vsyncpa [#allocation6], 1 }
 0x145   :  { %571 = vsyncpa [#allocation4], 1 }

</bundles_post_ra>
